<compile_context>
chip_gen: v5e
topology: v5e:2x2
jax: 0.10.0
libtpu: 0.0.40
codegen_flags: <defaults>
</compile_context>

<pallas_src>
import functools

import jax
import jax.numpy as jnp
from jax.experimental import pallas as pl
from jax.experimental.pallas import tpu as pltpu

BN_EPS = 1e-5
LANE = 128

# Largest batch handled by the single fused (resident-x) kernel.  Keeps all
# (n, 128) f32 intermediates comfortably inside v7x's 64 MiB physical VMEM
# (v5e/v6e have 128 MiB, so this is conservative on every generation).
N_FUSED_MAX = 2048
TILE_N = 1024                      # batch tile for the streaming fallback
VMEM_LIMIT = 32 * 1024 * 1024


def _round_up(v, m):
    return (v + m - 1) // m * m


def _cdiv(a, b):
    return -(-a // b)


# --------------------------------------------------------------------------
# Shared MLP body on a lane-padded (rows, 128) f32 activation.
# All matmul dims are (8,128)-aligned; padded rows/cols of the weights are
# zero so the padding is numerically inert.  Output is sliced narrow.
# --------------------------------------------------------------------------
def _mlp_padded(xb, w1_ref, b1_ref, w2_ref, b2_ref, w3_ref, b3_ref, out_dim):
    h = jnp.dot(xb, w1_ref[...], preferred_element_type=jnp.float32) + b1_ref[...]
    h = jnp.maximum(h, 0.0)
    h = jnp.dot(h, w2_ref[...], preferred_element_type=jnp.float32) + b2_ref[...]
    h = jnp.maximum(h, 0.0)
    o = jnp.dot(h, w3_ref[...], preferred_element_type=jnp.float32) + b3_ref[...]
    return jnp.tanh(o[:, :out_dim])


# --------------------------------------------------------------------------
# Fused path: x fully resident in VMEM, read from HBM exactly once.
# --------------------------------------------------------------------------
def fused_kernel(x_ref, gamma_ref, beta_ref,
                 w1_ref, b1_ref, w2_ref, b2_ref, w3_ref, b3_ref,
                 o_ref, xpad_ref, *, input_dim, out_dim):
    x = x_ref[...].astype(jnp.float32)                 # (n, input_dim), unpadded
    # Training-mode BN stats with centered variance (no E[x^2]-E[x]^2 cancellation).
    mean = jnp.mean(x, axis=0, keepdims=True)
    xc = x - mean
    var = jnp.mean(xc * xc, axis=0, keepdims=True)
    xn = xc * (gamma_ref[...] * jax.lax.rsqrt(var + BN_EPS)) + beta_ref[...]

    # Zero-extend to the 128-lane layout inside the kernel (no padded x in HBM).
    xpad_ref[...] = jnp.zeros_like(xpad_ref)
    xpad_ref[:, :input_dim] = xn
    o_ref[...] = _mlp_padded(xpad_ref[...], w1_ref, b1_ref, w2_ref, b2_ref,
                             w3_ref, b3_ref, out_dim).astype(o_ref.dtype)


# --------------------------------------------------------------------------
# Fallback pass 1: per-feature sum / sum-of-squares over batch tiles.
# Accumulator outputs have constant index_maps; init at grid step 0.
# The ragged final tile is masked (its out-of-bounds rows are undefined).
# --------------------------------------------------------------------------
def bn_stats_kernel(x_ref, sum_ref, sumsq_ref, *, n, tile_n):
    @pl.when(pl.program_id(0) == 0)
    def _():
        sum_ref[...] = jnp.zeros_like(sum_ref)
        sumsq_ref[...] = jnp.zeros_like(sumsq_ref)

    x = x_ref[...].astype(jnp.float32)                 # (tile_n, input_dim)
    rows_left = n - pl.program_id(0) * tile_n
    row_id = jax.lax.broadcasted_iota(jnp.int32, x.shape, 0)
    x = jnp.where(row_id < rows_left, x, 0.0)
    sum_ref[...] += jnp.sum(x, axis=0, keepdims=True)
    sumsq_ref[...] += jnp.sum(x * x, axis=0, keepdims=True)


# --------------------------------------------------------------------------
# Fallback pass 2: normalize (hoisted scale/shift) + MLP + tanh per batch tile.
# --------------------------------------------------------------------------
def mlp_kernel(x_ref, scale_ref, shift_ref,
               w1_ref, b1_ref, w2_ref, b2_ref, w3_ref, b3_ref,
               o_ref, xpad_ref, *, input_dim, out_dim):
    x = x_ref[...].astype(jnp.float32)                 # (tile_n, input_dim)
    xn = x * scale_ref[...] + shift_ref[...]           # BN folded into scale/shift

    # Zero the scratch every step (NOT pl.when(pid==0)): with "parallel"
    # megacore sharding the second TensorCore never executes program_id 0.
    xpad_ref[...] = jnp.zeros_like(xpad_ref)
    xpad_ref[:, :input_dim] = xn
    o_ref[...] = _mlp_padded(xpad_ref[...], w1_ref, b1_ref, w2_ref, b2_ref,
                             w3_ref, b3_ref, out_dim).astype(o_ref.dtype)


# --------------------------------------------------------------------------
# Wrapper.
# --------------------------------------------------------------------------
def airsim_bc_forward(x, params):
    """Forward pass of AirSimBCModel (training-mode BatchNorm1d). x: (N, input_dim)."""
    n, input_dim = x.shape
    h1 = params["w1"].shape[1]          # 64
    h2 = params["w2"].shape[1]          # 32
    out_dim = params["w3"].shape[1]

    f_pad = _round_up(input_dim, LANE)
    h1_pad = _round_up(h1, LANE)
    h2_pad = _round_up(h2, LANE)
    o_pad = _round_up(out_dim, LANE)

    x = x.astype(jnp.float32)           # fed to the kernels unpadded

    def pad2(a, r, c):
        a = a.astype(jnp.float32)
        return jnp.pad(a, ((0, r - a.shape[0]), (0, c - a.shape[1])))

    # Weights stay f32 (tiny, resident in VMEM via constant index_maps).
    w1 = pad2(params["w1"], f_pad, h1_pad)
    b1 = pad2(params["b1"], 1, h1_pad)
    w2 = pad2(params["w2"], h1_pad, h2_pad)
    b2 = pad2(params["b2"], 1, h2_pad)
    w3 = pad2(params["w3"], h2_pad, o_pad)
    b3 = pad2(params["b3"], 1, o_pad)
    gamma = params["gamma"].astype(jnp.float32)
    beta = params["beta"].astype(jnp.float32)

    cparams = dict(vmem_limit_bytes=VMEM_LIMIT)

    if n <= N_FUSED_MAX:
        # ---- fused single pass: x streamed from HBM exactly once -----------
        out = pl.pallas_call(
            functools.partial(fused_kernel, input_dim=input_dim, out_dim=out_dim),
            out_shape=jax.ShapeDtypeStruct((n, out_dim), jnp.float32),
            scratch_shapes=[pltpu.VMEM((n, f_pad), jnp.float32)],
            compiler_params=pltpu.CompilerParams(**cparams),
        )(x, gamma, beta, w1, b1, w2, b2, w3, b3)
        return out

    # ---- streaming two-pass fallback for large N ----------------------------
    tile_n = TILE_N
    num_tiles = _cdiv(n, tile_n)

    # Pass 1: BN batch statistics (serial reduction over batch tiles).
    # TODO(synk): on v7x, split this into 2 per-core partial accumulators
    # (leading "parallel" axis of size 2 + tiny combine) to use both TensorCores.
    sums, sumsqs = pl.pallas_call(
        functools.partial(bn_stats_kernel, n=n, tile_n=tile_n),
        out_shape=(jax.ShapeDtypeStruct((1, input_dim), jnp.float32),
                   jax.ShapeDtypeStruct((1, input_dim), jnp.float32)),
        grid=(num_tiles,),
        in_specs=[pl.BlockSpec((tile_n, input_dim), lambda i: (i, 0))],
        out_specs=(pl.BlockSpec((1, input_dim), lambda i: (0, 0)),
                   pl.BlockSpec((1, input_dim), lambda i: (0, 0))),
        compiler_params=pltpu.CompilerParams(
            dimension_semantics=("arbitrary",), **cparams),
    )(x)

    # Hoisted BN math: one tiny XLA op instead of per-tile VPU/EUP work.
    # TODO(synk): E[x^2]-E[x]^2 (clamped) can lose precision when |mean| >> std.
    mean = sums / n
    var = jnp.maximum(sumsqs / n - mean * mean, 0.0)
    scale = gamma * jax.lax.rsqrt(var + BN_EPS)
    shift = beta - mean * scale

    flops = 2 * n * (f_pad * h1_pad + h1_pad * h2_pad + h2_pad * o_pad)
    bytes_accessed = (n * input_dim * 4 + n * out_dim * 4
                      + (w1.size + w2.size + w3.size
                         + b1.size + b2.size + b3.size) * 4
                      + 2 * input_dim * 4)

    const = lambda r, c: pl.BlockSpec((r, c), lambda i: (0, 0))
    out = pl.pallas_call(
        functools.partial(mlp_kernel, input_dim=input_dim, out_dim=out_dim),
        out_shape=jax.ShapeDtypeStruct((n, out_dim), jnp.float32),
        grid=(num_tiles,),
        in_specs=[
            pl.BlockSpec((tile_n, input_dim), lambda i: (i, 0)),  # x tile (unpadded)
            const(1, input_dim), const(1, input_dim),             # scale, shift
            const(f_pad, h1_pad), const(1, h1_pad),               # w1, b1
            const(h1_pad, h2_pad), const(1, h2_pad),              # w2, b2
            const(h2_pad, o_pad), const(1, o_pad),                # w3, b3
        ],
        out_specs=pl.BlockSpec((tile_n, out_dim), lambda i: (i, 0)),
        scratch_shapes=[pltpu.VMEM((tile_n, f_pad), jnp.float32)],
        compiler_params=pltpu.CompilerParams(
            dimension_semantics=("parallel",), **cparams),
        cost_estimate=pl.CostEstimate(
            flops=flops, transcendentals=n * out_dim,
            bytes_accessed=bytes_accessed),
    )(x, scale, shift, w1, b1, w2, b2, w3, b3)
    return out


# --------------------------------------------------------------------------
# Parameters (PyTorch-style init shapes) and plain-JAX reference.
# --------------------------------------------------------------------------
def init_params(key, input_dim, output_dim):
    ks = jax.random.split(key, 6)

    def lin(kw, kb, fan_in, fan_out):
        bound = float(fan_in) ** -0.5
        w = jax.random.uniform(kw, (fan_in, fan_out), jnp.float32, -bound, bound)
        b = jax.random.uniform(kb, (1, fan_out), jnp.float32, -bound, bound)
        return w, b

    w1, b1 = lin(ks[0], ks[1], input_dim, 64)
    w2, b2 = lin(ks[2], ks[3], 64, 32)
    w3, b3 = lin(ks[4], ks[5], 32, output_dim)
    return {
        "gamma": jnp.ones((1, input_dim), jnp.float32),
        "beta": jnp.zeros((1, input_dim), jnp.float32),
        "w1": w1, "b1": b1, "w2": w2, "b2": b2, "w3": w3, "b3": b3,
    }


def airsim_bc_reference(x, params):
    x = x.astype(jnp.float32)
    mean = jnp.mean(x, axis=0, keepdims=True)
    var = jnp.mean((x - mean) ** 2, axis=0, keepdims=True)
    xh = (x - mean) * jax.lax.rsqrt(var + BN_EPS) * params["gamma"] + params["beta"]
    h = jnp.maximum(xh @ params["w1"] + params["b1"], 0.0)
    h = jnp.maximum(h @ params["w2"] + params["b2"], 0.0)
    return jnp.tanh(h @ params["w3"] + params["b3"])


if __name__ == "__main__":
    key = jax.random.PRNGKey(0)
    k_x, k_p, k_x2 = jax.random.split(key, 3)

    input_dim, output_dim = 16, 4
    params = init_params(k_p, input_dim, output_dim)

    # Small batch -> fused resident-x kernel.
    x_small = jax.random.normal(k_x, (8, input_dim), jnp.float32)
    out_small = jax.block_until_ready(airsim_bc_forward(x_small, params))
    ref_small = airsim_bc_reference(x_small, params)
    assert out_small.shape == (8, output_dim)
    assert bool(jnp.all(jnp.isfinite(out_small)))
    assert jnp.allclose(out_small, ref_small, atol=2e-2, rtol=2e-2), \
        float(jnp.max(jnp.abs(out_small - ref_small)))

    # Larger batch (not a multiple of the tile) -> streaming two-pass fallback.
    n_large = N_FUSED_MAX + TILE_N + 40
    x_large = jax.random.normal(k_x2, (n_large, input_dim), jnp.float32)
    out_large = jax.block_until_ready(airsim_bc_forward(x_large, params))
    ref_large = airsim_bc_reference(x_large, params)
    assert out_large.shape == (n_large, output_dim)
    assert bool(jnp.all(jnp.isfinite(out_large)))
    assert jnp.allclose(out_large, ref_large, atol=2e-2, rtol=2e-2), \
        float(jnp.max(jnp.abs(out_large - ref_large)))

    print("KERNEL_OK")
</pallas_src>

<mosaic_0001>
module attributes {stable_mosaic.version = 11 : i64} {
  func.func @fused_kernel(%arg0: memref<8x16xf32, #tpu.memory_space<vmem>>, %arg1: memref<1x16xf32, #tpu.memory_space<vmem>>, %arg2: memref<1x16xf32, #tpu.memory_space<vmem>>, %arg3: memref<128x128xf32, #tpu.memory_space<vmem>>, %arg4: memref<1x128xf32, #tpu.memory_space<vmem>>, %arg5: memref<128x128xf32, #tpu.memory_space<vmem>>, %arg6: memref<1x128xf32, #tpu.memory_space<vmem>>, %arg7: memref<128x128xf32, #tpu.memory_space<vmem>>, %arg8: memref<1x128xf32, #tpu.memory_space<vmem>>, %arg9: memref<8x4xf32, #tpu.memory_space<vmem>>, %arg10: memref<8x128xf32, #tpu.memory_space<vmem>>) attributes {dimension_semantics = [], scalar_prefetch = 0 : i64, scratch_operands = 1 : i64, tpu.core_type = #tpu.core_type<tc>} {
    %c0 = arith.constant 0 : index
    %c0_0 = arith.constant 0 : index
    %0 = vector.load %arg0[%c0, %c0_0] : memref<8x16xf32, #tpu.memory_space<vmem>>, vector<8x16xf32>
    %cst = arith.constant dense<0.000000e+00> : vector<16xf32>
    %1 = vector.multi_reduction <add>, %0, %cst [0] : vector<8x16xf32> to vector<16xf32>
    %2 = vector.shape_cast %1 : vector<16xf32> to vector<1x16xf32>
    %cst_1 = arith.constant 8.000000e+00 : f32
    %3 = vector.broadcast %cst_1 : f32 to vector<1x16xf32>
    %4 = arith.divf %2, %3 : vector<1x16xf32>
    %5 = vector.broadcast %4 : vector<1x16xf32> to vector<8x16xf32>
    %6 = arith.subf %0, %5 : vector<8x16xf32>
    %7 = arith.mulf %6, %6 : vector<8x16xf32>
    %cst_2 = arith.constant dense<0.000000e+00> : vector<16xf32>
    %8 = vector.multi_reduction <add>, %7, %cst_2 [0] : vector<8x16xf32> to vector<16xf32>
    %9 = vector.shape_cast %8 : vector<16xf32> to vector<1x16xf32>
    %cst_3 = arith.constant 8.000000e+00 : f32
    %10 = vector.broadcast %cst_3 : f32 to vector<1x16xf32>
    %11 = arith.divf %9, %10 : vector<1x16xf32>
    %c0_4 = arith.constant 0 : index
    %c0_5 = arith.constant 0 : index
    %12 = vector.load %arg1[%c0_4, %c0_5] : memref<1x16xf32, #tpu.memory_space<vmem>>, vector<1x16xf32>
    %cst_6 = arith.constant 9.99999974E-6 : f32
    %13 = vector.broadcast %cst_6 : f32 to vector<1x16xf32>
    %14 = arith.addf %11, %13 : vector<1x16xf32>
    %15 = math.rsqrt %14 : vector<1x16xf32>
    %16 = arith.mulf %12, %15 : vector<1x16xf32>
    %17 = vector.broadcast %16 : vector<1x16xf32> to vector<8x16xf32>
    %18 = arith.mulf %6, %17 : vector<8x16xf32>
    %c0_7 = arith.constant 0 : index
    %c0_8 = arith.constant 0 : index
    %19 = vector.load %arg2[%c0_7, %c0_8] : memref<1x16xf32, #tpu.memory_space<vmem>>, vector<1x16xf32>
    %20 = vector.broadcast %19 : vector<1x16xf32> to vector<8x16xf32>
    %21 = arith.addf %18, %20 : vector<8x16xf32>
    %cst_9 = arith.constant 0.000000e+00 : f32
    %22 = vector.broadcast %cst_9 : f32 to vector<8x128xf32>
    %c0_10 = arith.constant 0 : index
    %c0_11 = arith.constant 0 : index
    %23 = vector.load %arg10[%c0_10, %c0_11] : memref<8x128xf32, #tpu.memory_space<vmem>>, vector<8x128xf32>
    tpu.vector_store %arg10[%c0_10, %c0_11], %22 {strides = array<i32>} : memref<8x128xf32, #tpu.memory_space<vmem>>, vector<8x128xf32>,
    %c0_12 = arith.constant 0 : index
    %c0_13 = arith.constant 0 : index
    %24 = vector.load %arg10[%c0_12, %c0_13] : memref<8x128xf32, #tpu.memory_space<vmem>>, vector<8x16xf32>
    tpu.vector_store %arg10[%c0_12, %c0_13], %21 {strides = array<i32>} : memref<8x128xf32, #tpu.memory_space<vmem>>, vector<8x16xf32>,
    %c0_14 = arith.constant 0 : index
    %c0_15 = arith.constant 0 : index
    %25 = vector.load %arg10[%c0_14, %c0_15] : memref<8x128xf32, #tpu.memory_space<vmem>>, vector<8x128xf32>
    %c0_16 = arith.constant 0 : index
    %c0_17 = arith.constant 0 : index
    %26 = vector.load %arg3[%c0_16, %c0_17] : memref<128x128xf32, #tpu.memory_space<vmem>>, vector<128x128xf32>
    %cst_18 = arith.constant dense<0.000000e+00> : vector<8x128xf32>
    %27 = tpu.matmul %25, %26, %cst_18 {dimension_numbers = #tpu.dot_dimension_numbers<[1], [0], [0], [1], [0, 0, 1, 1], [], []>} : vector<8x128xf32>, vector<128x128xf32>, vector<8x128xf32> -> vector<8x128xf32>
    %c0_19 = arith.constant 0 : index
    %c0_20 = arith.constant 0 : index
    %28 = vector.load %arg4[%c0_19, %c0_20] : memref<1x128xf32, #tpu.memory_space<vmem>>, vector<1x128xf32>
    %29 = vector.broadcast %28 : vector<1x128xf32> to vector<8x128xf32>
    %30 = arith.addf %27, %29 : vector<8x128xf32>
    %cst_21 = arith.constant 0.000000e+00 : f32
    %31 = vector.broadcast %cst_21 : f32 to vector<8x128xf32>
    %32 = arith.maximumf %30, %31 : vector<8x128xf32>
    %c0_22 = arith.constant 0 : index
    %c0_23 = arith.constant 0 : index
    %33 = vector.load %arg5[%c0_22, %c0_23] : memref<128x128xf32, #tpu.memory_space<vmem>>, vector<128x128xf32>
    %cst_24 = arith.constant dense<0.000000e+00> : vector<8x128xf32>
    %34 = tpu.matmul %32, %33, %cst_24 {dimension_numbers = #tpu.dot_dimension_numbers<[1], [0], [0], [1], [0, 0, 1, 1], [], []>} : vector<8x128xf32>, vector<128x128xf32>, vector<8x128xf32> -> vector<8x128xf32>
    %c0_25 = arith.constant 0 : index
    %c0_26 = arith.constant 0 : index
    %35 = vector.load %arg6[%c0_25, %c0_26] : memref<1x128xf32, #tpu.memory_space<vmem>>, vector<1x128xf32>
    %36 = vector.broadcast %35 : vector<1x128xf32> to vector<8x128xf32>
    %37 = arith.addf %34, %36 : vector<8x128xf32>
    %cst_27 = arith.constant 0.000000e+00 : f32
    %38 = vector.broadcast %cst_27 : f32 to vector<8x128xf32>
    %39 = arith.maximumf %37, %38 : vector<8x128xf32>
    %c0_28 = arith.constant 0 : index
    %c0_29 = arith.constant 0 : index
    %40 = vector.load %arg7[%c0_28, %c0_29] : memref<128x128xf32, #tpu.memory_space<vmem>>, vector<128x128xf32>
    %cst_30 = arith.constant dense<0.000000e+00> : vector<8x128xf32>
    %41 = tpu.matmul %39, %40, %cst_30 {dimension_numbers = #tpu.dot_dimension_numbers<[1], [0], [0], [1], [0, 0, 1, 1], [], []>} : vector<8x128xf32>, vector<128x128xf32>, vector<8x128xf32> -> vector<8x128xf32>
    %c0_31 = arith.constant 0 : index
    %c0_32 = arith.constant 0 : index
    %42 = vector.load %arg8[%c0_31, %c0_32] : memref<1x128xf32, #tpu.memory_space<vmem>>, vector<1x128xf32>
    %43 = vector.broadcast %42 : vector<1x128xf32> to vector<8x128xf32>
    %44 = arith.addf %41, %43 : vector<8x128xf32>
    %45 = vector.extract_strided_slice %44 {offsets = [0, 0], sizes = [8, 4], strides = [1, 1]} : vector<8x128xf32> to vector<8x4xf32>
    %46 = math.tanh %45 : vector<8x4xf32>
    %c0_33 = arith.constant 0 : index
    %c0_34 = arith.constant 0 : index
    %47 = vector.load %arg9[%c0_33, %c0_34] : memref<8x4xf32, #tpu.memory_space<vmem>>, vector<8x4xf32>
    tpu.vector_store %arg9[%c0_33, %c0_34], %46 {strides = array<i32>} : memref<8x4xf32, #tpu.memory_space<vmem>>, vector<8x4xf32>,
    return
  }
}

</mosaic_0001>

<bundles_post_ra>
// kernel: tpu_custom_call.1
= control target key start
LH: loop header
LB: loop body
LE: loop exit
PB: predicated region body
PF: predicated region fallthrough
CT: control target
= control target key end

     0   :  { %14 = vsyncpa [#allocation4], 0  ;;  %s527_s0 = inlined_call_operand.hbm [shape: f32[8,16], index: 0, kind: input, shape index: {}]   ;;  %s528_s1 = inlined_call_operand.hbm [shape: f32[1,16], index: 1, kind: input, shape index: {}]   ;;  %s529_s2 = inlined_call_operand.vmem [shape: f32[1,16], index: 2, kind: input, shape index: {}]   ;;  %s530_s3 = inlined_call_operand.hbm [shape: f32[128,128], index: 3, kind: input, shape index: {}]   ;;  %s531_s4 = inlined_call_operand.vmem [shape: f32[1,128], index: 4, kind: input, shape index: {}]   ;;  %s532_s5 = inlined_call_operand.hbm [shape: f32[128,128], index: 5, kind: input, shape index: {}]   ;;  %s533_s6 = inlined_call_operand.vmem [shape: f32[1,128], index: 6, kind: input, shape index: {}]   ;;  %s534_s7 = inlined_call_operand.hbm [shape: f32[128,128], index: 7, kind: input, shape index: {}]   ;;  %s535_s8 = inlined_call_operand.vmem [shape: f32[1,128], index: 8, kind: input, shape index: {}]   ;;  %s536_s9 = inlined_call_operand.vmem [shape: f32[8,4], index: 9, kind: output, shape index: {}]  }
   0x1   :  { %15 = vsyncpa [#allocation6], 0  ;;  %s33_s11 = sshll.u32 %s528_s1, 4  ;;  %s34_s11 = int_to_ptr.hbm [resolvable:$true] %s33_s11 }
   0x2   :  { %16 = vsyncpa [#allocation9], 0  ;;  %s435_s12 = smov [#allocation5]   ;;  %s60_s16 = sshll.u32 %s532_s5, 4  ;;  %s61_s16 = int_to_ptr.hbm [resolvable:$true] %s60_s16 }
   0x3   :  { %s35_s13 = sshll.u32 %s435_s12, 4  ;;  %s436_s17 = smov [#allocation8]   ;;  %s36_s13 = int_to_ptr.vmem [resolvable:$true] %s35_s13 }
   0x4   :  { %38 = dma.hbm_to_vmem [thread:$0]  %s34_s11, 16, %s36_s13, [#allocation6]  }
   0x5   :  { %s62_s18 = sshll.u32 %s436_s17, 4  ;;  %s22_s21 = sshll.u32 %s527_s0, 4  ;;  %s63_s18 = int_to_ptr.vmem [resolvable:$true] %s62_s18  ;;  %s23_s21 = int_to_ptr.hbm [resolvable:$true] %s22_s21 }
   0x6   :  { %s437_s1 = smov 128   ;;  %s438_s22 = smov 8  }
   0x7   :  { %68 = dma.hbm_to_vmem [thread:$0]  %s61_s16, 2048, %s63_s18, [#allocation9], %s437_s1, %s437_s1, %s438_s22  }
   0x8   :  { %s45_s25 = sshll.u32 %s530_s3, 4  ;;  %s439_s26 = smov [#allocation3]   ;;  %s46_s25 = int_to_ptr.hbm [resolvable:$true] %s45_s25 }
   0x9   :  { %s24_s27 = sshll.u32 %s439_s26, 4  ;;  %s440_s5 = smov [#allocation7]   ;;  %s25_s27 = int_to_ptr.vmem [resolvable:$true] %s24_s27 }
   0xa   :  { %27 = dma.hbm_to_vmem [thread:$0]  %s23_s21, 128, %s25_s27, [#allocation4]  }
   0xb   :  { %s47_s28 = sshll.u32 %s440_s5, 4  ;;  %s75_s0 = sshll.u32 %s534_s7, 4  ;;  %s48_s28 = int_to_ptr.vmem [resolvable:$true] %s47_s28  ;;  %s76_s0 = int_to_ptr.hbm [resolvable:$true] %s75_s0 }
   0xc   :  { %53 = dma.hbm_to_vmem [thread:$0]  %s46_s25, 2048, %s48_s28, [#allocation6], %s437_s1, %s437_s1, %s438_s22  }
   0xd   :  { %s441_s10 = smov [#allocation10]  }
   0xe   :  { %s77_s11 = sshll.u32 %s441_s10, 4  ;;  %s78_s11 = int_to_ptr.vmem [resolvable:$true] %s77_s11 }
   0xf   :  { %83 = dma.hbm_to_vmem [thread:$0]  %s76_s0, 2048, %s78_s11, [#allocation9], %s437_s1, %s437_s1, %s438_s22  }
  0x10   :  { %429 = dma.done.wait [#allocation4], 128  }
  0x11   :  { %430 = vsyncadd [#allocation4], 4294967168 }
  0x12   :  { %431 = dma.done.wait [#allocation6], 2064  }
  0x13   :  { %432 = vsyncadd [#allocation6], 4294965232 }
  0x14   :  { %433 = dma.done.wait [#allocation9], 4096  }
  0x15   :  { %434 = vsyncadd [#allocation9], 4294963200  ;;  %v442_v0 = vmov 8.0   ;;  %v173_v2 = vld [vmem:[#allocation7 + $0x78] sm:$0xff]  ;;  %v172_v3 = vld [vmem:[#allocation7 + $0x70] sm:$0xff]  ;;  %vm107_vm0 = vcmask 130048  }
  0x16   :  { %303 = vrcp.f32 %v442_v0  ;;  %178 = vmatpush.msra.mxu0 %v173_v2  ;;  %v171_v5 = vld [vmem:[#allocation7 + $0x68] sm:$0xff]  ;;  %v170_v6 = vld [vmem:[#allocation7 + $0x60] sm:$0xff]  ;;  %v106_v8 = vld [vmem:[#allocation3] sm:$0xff]  ;;  %v443_v40 = vmov 0.0   ;;  %vm281_vm5 = vcmask 31744  }
  0x17   :  { %v169_v9 = vld [vmem:[#allocation7 + $0x58] sm:$0xff]  ;;  %v108_v10 = vsel %vm107_vm0, %v106_v8, 0.0  ;;  %v168_v12 = vld [vmem:[#allocation7 + $0x50] sm:$0xff]  ;;  %v167_v15 = vld [vmem:[#allocation7 + $0x48] sm:$0xff]  ;;  %155 = vst [vmem:[#allocation2] sm:$0xff] %v443_v40 }
  0x18   :  { %179 = vmatpush.msra.mxu0 %v172_v3  ;;  %v109_v11 = vrot.slane %v108_v10, 4  ;;  %v166_v17 = vld [vmem:[#allocation7 + $0x40] sm:$0xff]  ;;  %v165_v20 = vld [vmem:[#allocation7 + $0x38] sm:$0xff]  ;;  %v164_v22 = vld [vmem:[#allocation7 + $0x30] sm:$0xff] }
  0x19   :  { %v163_v25 = vld [vmem:[#allocation7 + $0x28] sm:$0xff]  ;;  %v162_v27 = vld [vmem:[#allocation7 + $0x20] sm:$0xff]  ;;  %v161_v29 = vld [vmem:[#allocation7 + $0x18] sm:$0xff] }
  0x1a   :  { %180 = vmatpush.msra.mxu0 %v171_v5  ;;  %v110_v14 = vadd.f32 %v109_v11, %v108_v10  ;;  %v160_v31 = vld [vmem:[#allocation7 + $0x10] sm:$0xff]  ;;  %v159_v33 = vld [vmem:[#allocation7 + $0x8] sm:$0xff]  ;;  %v158_v35 = vld [vmem:[#allocation7] sm:$0xff] }
  0x1b   :  { %v214_v44 = vld [vmem:[#allocation8 + $0x78] sm:$0xff]  ;;  %v213_v45 = vld [vmem:[#allocation8 + $0x70] sm:$0xff]  ;;  %v212_v46 = vld [vmem:[#allocation8 + $0x68] sm:$0xff] }
  0x1c   :  { %v304_v1 = vpop.eup %303  ;;  %181 = vmatpush.msra.mxu0 %v170_v6  ;;  %v111_v16 = vrot.slane %v110_v14, 2  ;;  %219 = vmatpush.msra.mxu1 %v214_v44  ;;  %v211_v48 = vld [vmem:[#allocation8 + $0x60] sm:$0xff]  ;;  %v210_v50 = vld [vmem:[#allocation8 + $0x58] sm:$0xff]  ;;  %v209_v52 = vld [vmem:[#allocation8 + $0x50] sm:$0xff] }
  0x1d   :  { %v116_v4 = vmul.f32 8.0, %v304_v1  ;;  %vm120_vm1 = vweird.f32 %v304_v1  ;;  %v208_v54 = vld [vmem:[#allocation8 + $0x48] sm:$0xff]  ;;  %v207_v56 = vld [vmem:[#allocation8 + $0x40] sm:$0xff]  ;;  %v133_v57 = vld [vmem:[#allocation5] sm:$0x1] }
  0x1e   :  { %182 = vmatpush.msra.mxu0 %v169_v9  ;;  %v112_v19 = vadd.f32 %v111_v16, %v110_v14  ;;  %220 = vmatpush.msra.mxu1 %v213_v45  ;;  %v206_v59 = vld [vmem:[#allocation8 + $0x38] sm:$0xff]  ;;  %v205_v62 = vld [vmem:[#allocation8 + $0x30] sm:$0xff]  ;;  %v299_v0 = vld [vmem:[%s529_s2] ss:$0 sm:$0xff] }
  0x1f   :  { %v117_v7 = vsub.f32 1.0, %v116_v4  ;;  %v203_v3 = vld [vmem:[#allocation8 + $0x20] sm:$0xff]  ;;  %v202_v5 = vld [vmem:[#allocation8 + $0x18] sm:$0xff]  ;;  %v254_v11 = vld [vmem:[#allocation10 + $0x70] sm:$0xff] }
  0x20   :  { %183 = vmatpush.msra.mxu0 %v168_v12  ;;  %v113_v21 = vrot.slane %v112_v19, 1  ;;  %221 = vmatpush.msra.mxu1 %v212_v46  ;;  %v199_v9 = vld [vmem:[#allocation8] sm:$0xff]  ;;  %v255_v10 = vld [vmem:[#allocation10 + $0x78] sm:$0xff]  ;;  %v253_v12 = vld [vmem:[#allocation10 + $0x68] sm:$0xff] }
  0x21   :  { %v118_v13 = vmul.f32 %v304_v1, %v117_v7  ;;  %v201_v7 = vld [vmem:[#allocation8 + $0x10] sm:$0xff]  ;;  %260 = vmatpush.msra.mxu2 %v255_v10  ;;  %v251_v14 = vld [vmem:[#allocation10 + $0x58] sm:$0xff]  ;;  %v249_v16 = vld [vmem:[#allocation10 + $0x48] sm:$0xff] }
  0x22   :  { %184 = vmatpush.msra.mxu0 %v167_v15  ;;  %v114_v24 = vadd.f32 %v113_v21, %v112_v19  ;;  %222 = vmatpush.msra.mxu1 %v211_v48  ;;  %v250_v15 = vld [vmem:[#allocation10 + $0x50] sm:$0xff]  ;;  %v244_v21 = vld [vmem:[#allocation10 + $0x20] sm:$0xff] }
  0x23   :  { %v119_v18 = vadd.f32 %v304_v1, %v118_v13  ;;  %261 = vmatpush.msra.mxu2 %v254_v11  ;;  %v252_v13 = vld [vmem:[#allocation10 + $0x60] sm:$0xff]  ;;  %v246_v19 = vld [vmem:[#allocation10 + $0x30] sm:$0xff] }
  0x24   :  { %185 = vmatpush.msra.mxu0 %v166_v17  ;;  %223 = vmatpush.msra.mxu1 %v210_v50  ;;  %v248_v17 = vld [vmem:[#allocation10 + $0x40] sm:$0xff] }
  0x25   :  { %v121_v23 = vsel %vm120_vm1, %v304_v1, %v119_v18  ;;  %v204_v1 = vld [vmem:[#allocation8 + $0x28] sm:$0xff]  ;;  %262 = vmatpush.msra.mxu2 %v253_v12  ;;  %v247_v18 = vld [vmem:[#allocation10 + $0x38] sm:$0xff] }
  0x26   :  { %186 = vmatpush.msra.mxu0 %v165_v20  ;;  %v122_v26 = vmul.f32 %v121_v23, %v114_v24  ;;  %224 = vmatpush.msra.mxu1 %v209_v52  ;;  %v245_v20 = vld [vmem:[#allocation10 + $0x28] sm:$0xff] }
  0x27   :  { %263 = vmatpush.msra.mxu2 %v252_v13 }
  0x28   :  { %187 = vmatpush.msra.mxu0 %v164_v22  ;;  %v123_v28 = vsub.f32 %v106_v8, %v122_v26  ;;  %225 = vmatpush.msra.mxu1 %v208_v54  ;;  %v200_v8 = vld [vmem:[#allocation8 + $0x8] sm:$0xff]  ;;  %v243_v22 = vld [vmem:[#allocation10 + $0x18] sm:$0xff] }
  0x29   :  { %264 = vmatpush.msra.mxu2 %v251_v14 }
  0x2a   :  { %188 = vmatpush.msra.mxu0 %v163_v25  ;;  %v124_v30 = vmul.f32 %v123_v28, %v123_v28  ;;  %226 = vmatpush.msra.mxu1 %v207_v56 }
  0x2b   :  { %265 = vmatpush.msra.mxu2 %v250_v15 }
  0x2c   :  { %189 = vmatpush.msra.mxu0 %v162_v27  ;;  %v125_v32 = vsel %vm107_vm0, %v124_v30, 0.0  ;;  %227 = vmatpush.msra.mxu1 %v206_v59  ;;  %v242_v27 = vld [vmem:[#allocation10 + $0x10] sm:$0xff]  ;;  %v301_v30 = vld [vmem:[%s533_s6] ss:$0 sm:$0xff] }
  0x2d   :  { %v126_v34 = vrot.slane %v125_v32, 4  ;;  %266 = vmatpush.msra.mxu2 %v249_v16 }
  0x2e   :  { %190 = vmatpush.msra.mxu0 %v161_v29  ;;  %228 = vmatpush.msra.mxu1 %v205_v62  ;;  %v240_v29 = vld [vmem:[#allocation10] sm:$0xff] }
  0x2f   :  { %v127_v36 = vadd.f32 %v126_v34, %v125_v32  ;;  %267 = vmatpush.msra.mxu2 %v248_v17  ;;  %v302_v34 = vld [vmem:[%s535_s8] ss:$0 sm:$0xff] }
  0x30   :  { %191 = vmatpush.msra.mxu0 %v160_v31  ;;  %229 = vmatpush.msra.mxu1 %v204_v1 }
  0x31   :  { %v128_v37 = vrot.slane %v127_v36, 2  ;;  %268 = vmatpush.msra.mxu2 %v247_v18 }
  0x32   :  { %192 = vmatpush.msra.mxu0 %v159_v33  ;;  %230 = vmatpush.msra.mxu1 %v203_v3 }
  0x33   :  { %v129_v38 = vadd.f32 %v128_v37, %v127_v36  ;;  %269 = vmatpush.msra.mxu2 %v246_v19 }
  0x34   :  { %193 = vmatpush.msra.mxu0 %v158_v35  ;;  %231 = vmatpush.msra.mxu1 %v202_v5 }
  0x35   :  { %v130_v39 = vrot.slane %v129_v38, 1  ;;  %270 = vmatpush.msra.mxu2 %v245_v20 }
  0x36   :  { %232 = vmatpush.msra.mxu1 %v201_v7 }
  0x37   :  { %v131_v41 = vadd.f32 %v130_v39, %v129_v38  ;;  %271 = vmatpush.msra.mxu2 %v244_v21 }
  0x38   :  { %233 = vmatpush.msra.mxu1 %v200_v8 }
  0x39   :  { %v132_v42 = vmul.f32 %v131_v41, %v121_v23  ;;  %v300_v23 = vld [vmem:[%s531_s4] ss:$0 sm:$0xff]  ;;  %272 = vmatpush.msra.mxu2 %v243_v22 }
  0x3a   :  { %234 = vmatpush.msra.mxu1 %v199_v9 }
  0x3b   :  { %v134_v43 = vadd.f32 1e-05, %v132_v42  ;;  %273 = vmatpush.msra.mxu2 %v242_v27 }
  0x3d   :  { %305 = vrsqrt.f32 %v134_v43  ;;  %vm141_vm2 = vweird.f32 %v134_v43 }
  0x43   :  { %v306_v47 = vpop.eup %305 }
  0x44   :  { %v136_v49 = vmul.f32 %v306_v47, %v134_v43  ;;  %vm142_vm3 = vweird.f32 %v306_v47 }
  0x45   :  { %vm143_vm4 = vmor %vm141_vm2, %vm142_vm3 }
  0x46   :  { %v137_v51 = vmul.f32 %v306_v47, %v136_v49 }
  0x48   :  { %v138_v53 = vmul.f32 0.5, %v137_v51 }
  0x4a   :  { %v139_v55 = vsub.f32 1.5, %v138_v53 }
  0x4c   :  { %v140_v58 = vmul.f32 %v306_v47, %v139_v55 }
  0x4e   :  { %v144_v60 = vsel %vm143_vm4, %v306_v47, %v140_v58 }
  0x4f   :  { %v145_v61 = vmul.f32 %v144_v60, %v133_v57 }
  0x51   :  { %v147_v63 = vperm.slane %v145_v61, 0 }
  0x53   :  { %v149_v2 = vmul.f32 %v147_v63, %v123_v28  ;;  %v241_v28 = vld [vmem:[#allocation10 + $0x8] sm:$0xff] }
  0x54   :  { %274 = vmatpush.msra.mxu2 %v241_v28 }
  0x55   :  { %v154_v4 = vadd.f32 %v299_v0, %v149_v2 }
  0x56   :  { %275 = vmatpush.msra.mxu2 %v240_v29 }
  0x57   :  { %156 = vst.msk [vmem:[#allocation2] sm:$0xff] %vm107_vm0, %v154_v4 }
  0x5e   :  { %v157_v6 = vld [vmem:[#allocation2] sm:$0xff] }
  0x5f   :  { %194 = vmatmul.f32.vlgmr.msra.gmra.mxu0 %v157_v6 }
  0xdc   :  { %v195_v24 = vpop.f32.mrf.mxu0 }
  0xdd   :  { %v196_v25 = vadd.f32 %v300_v23, %v195_v24 }
  0xdf   :  { %v198_v26 = vmax.f32 %v196_v25, 0.0 }
  0xe1   :  { %235 = vmatmul.f32.vlgmr.msra.gmra.mxu1 %v198_v26 }
 0x15e   :  { %v236_v31 = vpop.f32.mrf.mxu1 }
 0x15f   :  { %v237_v32 = vadd.f32 %v301_v30, %v236_v31 }
 0x161   :  { %v239_v33 = vmax.f32 %v237_v32, 0.0 }
 0x163   :  { %276 = vmatmul.f32.vlgmr.msra.gmra.mxu2 %v239_v33 }
 0x1e6   :  { %v277_v35 = vpop.f32.mrf.mxu2 }
 0x1e7   :  { %v278_v36 = vadd.f32 %v302_v34, %v277_v35 }
 0x1e9   :  { %307 = vtanh.f32 %v278_v36 }
 0x1ef   :  { %v308_v37 = vpop.eup %307 }
 0x1f0   :  { %282 = vst.msk [vmem:[%s536_s9] sm:$0xff] %vm281_vm5, %v308_v37 }
 0x1f1   :  { %287 = vsyncpa [#allocation4], 1 }
 0x1f2   :  { %288 = vsyncpa [#allocation6], 1 }
 0x1f3   :  { %289 = vsyncpa [#allocation9], 1 }

</bundles_post_ra>
